<compile_context>
chip_gen: v7x
topology: tpu7x:2x2x1
jax: 0.10.0
libtpu: 0.0.40
codegen_flags: <defaults>
</compile_context>

<pallas_src>
import functools

import jax
import jax.numpy as jnp
from jax.experimental import pallas as pl
from jax.experimental.pallas import tpu as pltpu


# ----------------------------------------------------------------------------
# One-time on-device calibration of pltpu.roll's direction convention.
# We need shift(a, k)[:, i] == a[:, (i + k) % L]; verifying the sign once makes
# it impossible for the conv taps to come out mirrored.
# ----------------------------------------------------------------------------
_ROLL_SIGN = None


def _roll_probe_kernel(x_ref, o_ref):
    o_ref[...] = pltpu.roll(x_ref[...], 1, 1)


def _roll_sign():
    global _ROLL_SIGN
    if _ROLL_SIGN is None:
        x = jax.lax.broadcasted_iota(jnp.int32, (8, 128), 1)
        y = pl.pallas_call(
            _roll_probe_kernel,
            out_shape=jax.ShapeDtypeStruct((8, 128), jnp.int32))(x)
        # jnp.roll-like semantics -> y[0, 1] == 0 ; reversed -> y[0, 1] == 2.
        _ROLL_SIGN = 1 if int(y[0, 1]) == 0 else -1
    return _ROLL_SIGN


# ----------------------------------------------------------------------------
# Fused Inception ('type1') kernel body
# ----------------------------------------------------------------------------
def _inception_type1_kernel(x_ref, wa_ref, wb_ref, o_ref, *,
                            H, W, S, pad, n_red, n_mid, roll_sign):
    """Fused Inception-type1 block on lane-dense (channels, L) tiles.

    x_ref : (Cin, L)                L = images_per_block * H * W
    wa_ref: (n_red + n_tail, 2*Cin) fused 1x1 weights applied to [x ; pooled]
    wb_ref: (K, n_mid, K*n_red)     fused 5x5 weights (branch2 3x3 embedded)
    o_ref : (n_mid + n_tail, L)
    """
    L = x_ref.shape[-1]

    def shift(a, k):
        # shift(a, k)[:, i] == a[:, (i + k) % L]   (circular; wrapped lanes are
        # always overwritten by the clamp/mask selects below).
        if k == 0:
            return a
        return pltpu.roll(a, (-roll_sign * k) % L, axis=1)

    x = x_ref[...]                                             # (Cin, L)

    # Per-image row / column coordinate of every lane (works with batch folded
    # into the lane axis because coordinates are taken modulo S).
    lane = jax.lax.broadcasted_iota(jnp.int32, (1, L), 1)
    s_loc = lane % S
    yloc = s_loc // W
    xloc = s_loc % W

    # ---- branch 3 pooling: 3x3 / stride 1 / pad 1 max-pool (separable) ------
    neg = jnp.float32(-jnp.inf)
    cmax = jnp.maximum(
        x,
        jnp.maximum(jnp.where(xloc >= 1, shift(x, -1), neg),
                    jnp.where(xloc <= W - 2, shift(x, 1), neg)))
    pooled = jnp.maximum(
        cmax,
        jnp.maximum(jnp.where(yloc >= 1, shift(cmax, -W), neg),
                    jnp.where(yloc <= H - 2, shift(cmax, W), neg)))

    # ---- all four 1x1 convs in one block-diagonal matmul ---------------------
    #   rows [0, n_red)   -> h12 = relu([w1a; w2a] @ x)       (branch1/2 reduce)
    #   rows [n_red, ...) -> [relu(w3 @ pooled) ; relu(w4 @ x)]  (branch3/4)
    rhs = jnp.concatenate([x, pooled], axis=0)                 # (2*Cin, L)
    lin = jnp.maximum(
        jnp.dot(wa_ref[...], rhs, preferred_element_type=jnp.float32), 0.0)
    h12 = lin[:n_red]                                          # 8-aligned slice
    o34 = lin[n_red:]                                          # 8-aligned slice

    # ---- fused 5x5 conv (branch1 + zero-embedded 3x3 branch2), repl. pad ----
    # Column-clamped shifted copies of h12 (replication padding along W).
    rc = {k: shift(h12, k) for k in range(-pad, pad + 1)}
    col = {0: h12}
    for ox in range(1, pad + 1):
        hi = rc[ox]
        lo = rc[-ox]
        for j in range(ox - 1, -1, -1):
            hi = jnp.where(xloc == W - 1 - j, rc[j], hi)       # clamp right edge
            lo = jnp.where(xloc == j, rc[-j], lo)              # clamp left edge
        col[ox] = hi
        col[-ox] = lo
    # Tap stack, row index = (ox+pad)*n_red + channel  (8-aligned pieces).
    stack = jnp.concatenate([col[ox] for ox in range(-pad, pad + 1)], axis=0)

    # Row-shifted copies of the whole tap stack (replication padding along H),
    # accumulated through one matmul per row offset.
    rw = {k: shift(stack, k * W) for k in range(-pad, pad + 1)}
    acc = None
    for oy in range(-pad, pad + 1):
        taps = rw[oy]
        for j in range(abs(oy) - 1, -1, -1):
            if oy > 0:
                taps = jnp.where(yloc == H - 1 - j, rw[j], taps)   # bottom edge
            else:
                taps = jnp.where(yloc == j, rw[-j], taps)          # top edge
        part = jnp.dot(wb_ref[oy + pad], taps,
                       preferred_element_type=jnp.float32)
        acc = part if acc is None else acc + part
    o12 = jnp.maximum(acc, 0.0)                                # (n_mid, L)

    # ---- store each branch group straight into its 8-aligned row slice ------
    o_ref[pl.ds(0, n_mid), :] = o12
    o_ref[pl.ds(n_mid, o34.shape[0]), :] = o34


# ----------------------------------------------------------------------------
# Host-side weight packing
# ----------------------------------------------------------------------------
def _pack_1x1_weights(w1a, w2a, w3, w4, cin):
    """Block-diagonal 1x1 weights applied to the stacked RHS [x ; pooled]."""
    def flat(w):
        return w.reshape(w.shape[0], w.shape[1]).astype(jnp.float32)

    def z(rows):
        return jnp.zeros((rows, cin), jnp.float32)

    top = jnp.concatenate([
        jnp.concatenate([flat(w1a), z(w1a.shape[0])], axis=1),   # branch1 reduce
        jnp.concatenate([flat(w2a), z(w2a.shape[0])], axis=1),   # branch2 reduce
    ], axis=0)
    tail = jnp.concatenate([
        jnp.concatenate([z(w3.shape[0]), flat(w3)], axis=1),     # branch3 (pooled)
        jnp.concatenate([flat(w4), z(w4.shape[0])], axis=1),     # branch4 (x)
    ], axis=0)
    return jnp.concatenate([top, tail], axis=0)                  # (16, 2*Cin)


def _pack_spatial_weights(w1b, w2b):
    """Embed branch2's 3x3 into branch1's 5x5 tap grid (zero outer ring) and
    regroup as wb[dy] of shape (b1+b2, K*(b1r+b2r)), column = dx*(b1r+b2r)+c.
    (With replication padding the embedding is numerically exact.)"""
    b1, b1r, k1, _ = w1b.shape
    b2, b2r, k2, _ = w2b.shape
    K = max(k1, k2)
    crp, co = b1r + b2r, b1 + b2
    wfull = jnp.zeros((K, K, co, crp), jnp.float32)
    o1 = (K - k1) // 2
    wfull = wfull.at[o1:o1 + k1, o1:o1 + k1, :b1, :b1r].set(
        jnp.transpose(w1b, (2, 3, 0, 1)).astype(jnp.float32))
    o2 = (K - k2) // 2
    wfull = wfull.at[o2:o2 + k2, o2:o2 + k2, b1:, b1r:].set(
        jnp.transpose(w2b, (2, 3, 0, 1)).astype(jnp.float32))
    # (dy, dx, o, c) -> (dy, o, dx*crp + c)
    return jnp.transpose(wfull, (0, 2, 1, 3)).reshape(K, co, K * crp)


# ----------------------------------------------------------------------------
# Wrapper
# ----------------------------------------------------------------------------
def inception_builder_forward(x_nchw, params, block_type="type1"):
    if block_type != "type1":
        # TODO(synk): 'type2' branch1 (1x1 -> 3x3 -> 3x3) is not wired into the
        # fused kernel; only the 'type1' forward exercised here is implemented.
        raise NotImplementedError("only block_type='type1' is implemented")

    N, Cin, H, W = x_nchw.shape
    S = H * W
    b1r, b1 = params["w1a"].shape[0], params["w1b"].shape[0]
    b2r, b2 = params["w2a"].shape[0], params["w2b"].shape[0]
    b3, b4 = params["w3"].shape[0], params["w4"].shape[0]
    n_red, n_mid, n_tail = b1r + b2r, b1 + b2, b3 + b4
    c_tot = n_mid + n_tail
    K = params["w1b"].shape[-1]
    pad = (K - 1) // 2

    # Lane-dense, batch-folded layouts: (channels, N*H*W).
    x2d = jnp.transpose(x_nchw, (1, 0, 2, 3)).reshape(Cin, N * S)
    x2d = x2d.astype(jnp.float32)
    wa = _pack_1x1_weights(params["w1a"], params["w2a"], params["w3"],
                           params["w4"], Cin)
    wb = _pack_spatial_weights(params["w1b"], params["w2b"])

    # Two grid steps when possible so both v7x TensorCores get work; each block
    # holds a whole number of images folded into the lane axis.
    n_blocks = 2 if (N >= 2 and N % 2 == 0) else 1
    L = (N // n_blocks) * S

    kern = functools.partial(
        _inception_type1_kernel, H=H, W=W, S=S, pad=pad,
        n_red=n_red, n_mid=n_mid, roll_sign=_roll_sign())

    out2d = pl.pallas_call(
        kern,
        out_shape=jax.ShapeDtypeStruct((c_tot, N * S), jnp.float32),
        grid=(n_blocks,),
        in_specs=[
            pl.BlockSpec((Cin, L), lambda i: (0, i)),
            pl.BlockSpec(wa.shape, lambda i: (0, 0)),
            pl.BlockSpec(wb.shape, lambda i: (0, 0, 0)),
        ],
        out_specs=pl.BlockSpec((c_tot, L), lambda i: (0, i)),
        compiler_params=pltpu.CompilerParams(
            dimension_semantics=("parallel",)),
    )(x2d, wa, wb)

    return jnp.transpose(out2d.reshape(c_tot, N, H, W), (1, 0, 2, 3))


# ----------------------------------------------------------------------------
# Pure-JAX reference (for correctness check)
# ----------------------------------------------------------------------------
def _ref_conv_relu(x_nchw, w, pad):
    if pad > 0:
        x_nchw = jnp.pad(x_nchw, ((0, 0), (0, 0), (pad, pad), (pad, pad)),
                         mode="edge")
    y = jax.lax.conv_general_dilated(
        x_nchw, w, window_strides=(1, 1), padding="VALID",
        dimension_numbers=("NCHW", "OIHW", "NCHW"))
    return jax.nn.relu(y)


def _ref_maxpool3(x_nchw):
    return jax.lax.reduce_window(
        x_nchw, -jnp.inf, jax.lax.max,
        window_dimensions=(1, 1, 3, 3), window_strides=(1, 1, 1, 1),
        padding=((0, 0), (0, 0), (1, 1), (1, 1)))


def inception_builder_reference(x_nchw, params):
    o1 = _ref_conv_relu(_ref_conv_relu(x_nchw, params["w1a"], 0),
                        params["w1b"], 2)
    o2 = _ref_conv_relu(_ref_conv_relu(x_nchw, params["w2a"], 0),
                        params["w2b"], 1)
    o3 = _ref_conv_relu(_ref_maxpool3(x_nchw), params["w3"], 0)
    o4 = _ref_conv_relu(x_nchw, params["w4"], 0)
    return jnp.concatenate([o1, o2, o3, o4], axis=1)


# ----------------------------------------------------------------------------
# Main
# ----------------------------------------------------------------------------
if __name__ == "__main__":
    block_type = "type1"
    in_channels, b1_reduce, b1, b2_reduce, b2, b3, b4 = 8, 4, 8, 4, 8, 4, 4
    N, H, W = 2, 16, 16

    key = jax.random.PRNGKey(0)
    ks = jax.random.split(key, 8)

    def init_w(k, cout, cin, ksz):
        scale = 1.0 / jnp.sqrt(cin * ksz * ksz)
        return scale * jax.random.normal(k, (cout, cin, ksz, ksz), jnp.float32)

    params = {
        "w1a": init_w(ks[0], b1_reduce, in_channels, 1),
        "w1b": init_w(ks[1], b1, b1_reduce, 5),
        "w2a": init_w(ks[2], b2_reduce, in_channels, 1),
        "w2b": init_w(ks[3], b2, b2_reduce, 3),
        "w3":  init_w(ks[4], b3, in_channels, 1),
        "w4":  init_w(ks[5], b4, in_channels, 1),
    }

    x = jax.random.normal(ks[6], (N, in_channels, H, W), jnp.float32)

    out = jax.block_until_ready(
        inception_builder_forward(x, params, block_type))
    ref = jax.block_until_ready(inception_builder_reference(x, params))

    assert out.shape == (N, b1 + b2 + b3 + b4, H, W), out.shape
    assert jnp.allclose(out, ref, atol=1e-4, rtol=1e-4), (
        float(jnp.max(jnp.abs(out - ref))))

    print("KERNEL_OK")
</pallas_src>

<mosaic_0001>
module attributes {stable_mosaic.version = 11 : i64} {
  func.func @_roll_probe_kernel(%arg0: memref<8x128xi32, #tpu.memory_space<vmem>>, %arg1: memref<8x128xi32, #tpu.memory_space<vmem>>) attributes {dimension_semantics = [], scalar_prefetch = 0 : i64, scratch_operands = 0 : i64, tpu.core_type = #tpu.core_type<tc>} {
    %c0 = arith.constant 0 : index
    %c0_0 = arith.constant 0 : index
    %0 = vector.load %arg0[%c0, %c0_0] : memref<8x128xi32, #tpu.memory_space<vmem>>, vector<8x128xi32>
    %c1_i32 = arith.constant 1 : i32
    %1 = tpu.dynamic_rotate %0 by %c1_i32 dim 1 : vector<8x128xi32>, i32 -> vector<8x128xi32>
    %c0_1 = arith.constant 0 : index
    %c0_2 = arith.constant 0 : index
    %2 = vector.load %arg1[%c0_1, %c0_2] : memref<8x128xi32, #tpu.memory_space<vmem>>, vector<8x128xi32>
    tpu.vector_store %arg1[%c0_1, %c0_2], %1 {strides = array<i32>} : memref<8x128xi32, #tpu.memory_space<vmem>>, vector<8x128xi32>,
    return
  }
}

</mosaic_0001>

<bundles_post_ra>
// kernel: tpu_custom_call.1
= control target key start
LH: loop header
LB: loop body
LE: loop exit
PB: predicated region body
PF: predicated region fallthrough
CT: control target
= control target key end

     0   :  { %6 = vsyncpa [#allocation3], 0  ;;  %s128_s0 = inlined_call_operand.hbm [shape: s32[8,128], index: 0, kind: input, shape index: {}]   ;;  %s129_s1 = inlined_call_operand.hbm [shape: s32[8,128], index: 1, kind: output, shape index: {}]  }
   0x1   :  { %7 = vsyncpa [#allocation4], 0  ;;  %s91_s6 = smov [#allocation2]   ;;  %s43_s10 = scalar_lea.hbm %s128_s0, 128 }
   0x2   :  { %s14_s7 = sshll.u32 %s91_s6, 4  ;;  %p44_p0 = scmp.ne.s32.totalorder %s128_s0, %s43_s10  ;;  %s15_s7 = int_to_ptr.vmem [resolvable:$true] %s14_s7 }
   0x3   :  { %p47_p1 = scmp.lt.u32.totalorder %s43_s10, %s128_s0 }
   0x5   :  { %p49_p2 = pnand %p47_p1, %p44_p0 }
   0x7   :  { %52 = shalt.err (!%p49_p2)
}
   0x8   :  { %s53_s15 = scalar_lea.vmem %s15_s7, 128  ;;  %p58_p4 = scmp.lt.s32.totalorder %s15_s7, %s15_s7 }
   0x9   :  { %p54_p3 = scmp.ne.s32.totalorder %s15_s7, %s53_s15  ;;  %p59_p5 = scmp.lt.s32.totalorder %s53_s15, %s53_s15 }
   0xb   :  { %p60_p6 = por %p59_p5, %p58_p4 }
   0xd   :  { %p61_p7 = pnand %p60_p6, %p54_p3 }
   0xf   :  { %64 = shalt.err (!%p61_p7)
}
  0x10   :  { %17 = dma.hbm_to_vmem [thread:$0]  %s128_s0, 128, %s15_s7, [#allocation3]  }
  0x11   :  { %87 = dma.done.wait [#allocation3], 128  }
  0x12   :  { %88 = vsyncadd [#allocation3], 4294967168  ;;  %v21_v0 = vld [vmem:[#allocation2] sm:$0xff]  ;;  %s92_s18 = smov 1   ;;  %s93_s19 = smov [#allocation5]  }
  0x13   :  { %22 = vrot.lane.b32.xlu0 %v21_v0, %s92_s18  ;;  %s31_s20 = sshll.u32 %s93_s19, 4  ;;  %s32_s20 = int_to_ptr.vmem [resolvable:$true] %s31_s20 }
  0x14   :  { %s65_s21 = scalar_lea.vmem %s32_s20, 128  ;;  %p70_p9 = scmp.lt.s32.totalorder %s32_s20, %s32_s20 }
  0x15   :  { %p66_p8 = scmp.ne.s32.totalorder %s32_s20, %s65_s21  ;;  %p71_p10 = scmp.lt.s32.totalorder %s65_s21, %s65_s21 }
  0x17   :  { %p72_p11 = por %p71_p10, %p70_p9 }
  0x19   :  { %p73_p12 = pnand %p72_p11, %p66_p8 }
  0x85   :  { %v23_v1 = vpop.permute.xlu0 %22 }
  0x86   :  { %24 = vst [vmem:[#allocation5] sm:$0xff] %v23_v1 }
  0x87   :  { %76 = shalt.err (!%p73_p12)
}
  0x88   :  { %s77_s0 = scalar_lea.hbm %s129_s1, 128 }
  0x89   :  { %p78_p13 = scmp.ne.s32.totalorder %s129_s1, %s77_s0  ;;  %p81_p0 = scmp.lt.u32.totalorder %s77_s0, %s129_s1 }
  0x8b   :  { %p83_p1 = pnand %p81_p0, %p78_p13 }
  0x8d   :  { %86 = shalt.err (!%p83_p1)
}
  0x8e   :  { %34 = dma.vmem_to_hbm [thread:$0]  %s32_s20, 128, %s129_s1, [#allocation4]  }
  0x8f   :  { %89 = dma.done.wait [#allocation4], 128  }
  0x90   :  { %90 = vsyncadd [#allocation4], 4294967168 }
  0x91   :  { %38 = vsyncpa [#allocation3], 1 }
  0x92   :  { %39 = vsyncpa [#allocation4], 1 }

</bundles_post_ra>
